<compile_context>
chip_gen: v6e
topology: v6e:2x2x1
jax: 0.10.0
libtpu: 0.0.40
codegen_flags: <defaults>
</compile_context>

<pallas_src>
import functools

import jax
import jax.numpy as jnp
from jax import lax
from jax.experimental import pallas as pl
from jax.experimental.pallas import tpu as pltpu

_PAD_LABEL = int(jnp.iinfo(jnp.int32).min)  # sentinel label for padded rows
_BIG = 1e30                                 # pushes padded columns out of the hard-negative min


def _triplet_kernel(q_ref, k_ref, invq_ref, invk_ref, trow_ref, tcol_ref,
                    cbias_ref, out_ref, ap2_ref, an2_ref, *, margin, tm):
    j = pl.program_id(1)

    # Init the running hard-positive max / hard-negative min for this row tile.
    @pl.when(j == 0)
    def _():
        ap2_ref[...] = jnp.full_like(ap2_ref, -1.0)
        an2_ref[...] = jnp.full_like(an2_ref, _BIG)

    # NT Gram on the MXU: native dtype in, f32 accumulate.  No transposed key
    # copy and no f32 upcast copy are materialized (flash-attention pattern).
    gram = lax.dot_general(q_ref[...], k_ref[...],
                           dimension_numbers=(((1,), (1,)), ((), ())),
                           preferred_element_type=jnp.float32)          # (tm, tn)

    # Cosine via hoisted inverse norms; rows are (virtually) unit norm so the
    # squared pairwise distance is 2 - 2*cos.  cbias is +_BIG on padded columns.
    cos = gram * invq_ref[...] * invk_ref[...]                          # (tm,1)*(1,tn) broadcasts
    dist2 = (2.0 - 2.0 * cos) + cbias_ref[...]                          # (tm, tn)

    # Label mask as an int32 broadcast compare (pure VPU, no transpose).
    mask = trow_ref[...] == tcol_ref[...]                               # (tm, tn)

    # Hard mining on squared distances (sqrt is monotone) with running
    # accumulators across the key tiles.
    ap2_ref[...] = jnp.maximum(
        ap2_ref[...],
        jnp.max(jnp.where(mask, dist2, -1.0), axis=1, keepdims=True))
    an2_ref[...] = jnp.minimum(
        an2_ref[...],
        jnp.min(jnp.where(mask, _BIG, dist2), axis=1, keepdims=True))

    # Finalize: sqrt only the two (tm,1) mined results, per-row hinge, and store
    # lane-dense as a (1, tm) row via iota-select + sublane-sum (no relayout).
    @pl.when(j == pl.num_programs(1) - 1)
    def _():
        dist_ap = jnp.sqrt(jnp.maximum(ap2_ref[...], 1e-12))
        dist_an = jnp.sqrt(jnp.maximum(an2_ref[...], 1e-12))
        hinge = jnp.maximum(dist_ap - dist_an + margin, 0.0)            # (tm, 1)
        r = lax.broadcasted_iota(jnp.int32, (tm, tm), 0)
        c = lax.broadcasted_iota(jnp.int32, (tm, tm), 1)
        out_ref[...] = jnp.sum(
            jnp.where(r == c, jnp.broadcast_to(hinge, (tm, tm)), 0.0),
            axis=0, keepdims=True)                                      # (1, tm)


def _round_up(v, m):
    return (v + m - 1) // m * m


def _vmem_capacity_bytes():
    try:
        return int(pltpu.get_tpu_info().vmem_capacity_bytes)
    except Exception:
        return 64 << 20            # conservative fallback (v7x per-TensorCore VMEM)


def _vmem_estimate(tm, tn, d, feat_itemsize):
    blocks = 2 * (tm + tn) * d * feat_itemsize   # double-buffered q / k tiles
    temps = 10 * tm * tn * 4                     # gram / cos / dist2 / mask / wheres
    final = 3 * tm * tm * 4                      # lane-dense store (iota trick)
    small = 8 * (tm + tn) * 4                    # label / inv-norm / bias vectors
    return blocks + temps + final + small + (2 << 20)


def _pick_tiles(n, d, feat_itemsize, budget):
    if n <= 128:
        # Tiny batch: a single tile (pure matmul + VPU mining, one grid step).
        n_pad = _round_up(n, 8)
        return n_pad, n_pad, n_pad
    n_pad = _round_up(n, 256)
    # tm=256 fills the 256-wide v6e/v7x MXU; only when the parallel row axis
    # still has >= 2 steps so both v7x TensorCores stay busy.  v5e's MXU is
    # 128-wide so tm=128 costs it nothing.
    tm = 256 if n_pad >= 512 else 128
    # Prefer resident keys (grid_j == 1, keys DMA'd once); fall back to smaller
    # key tiles (flash-style running accumulators) when that would blow VMEM.
    for tn in (n_pad, 512, 256):
        if tn <= n_pad and n_pad % tn == 0 and \
                _vmem_estimate(tm, tn, d, feat_itemsize) <= budget:
            return n_pad, tm, tn
    return n_pad, 128, 256


def triplet_loss(inputs, targets, margin=0.3, *, block_q=None, block_k=None):
    """inputs: (n, feat_dim) float (f32/bf16); targets: (n,) int class labels."""
    n, d = inputs.shape
    feat_itemsize = jnp.dtype(inputs.dtype).itemsize

    vmem_cap = _vmem_capacity_bytes()
    budget = min(vmem_cap * 3 // 4, 100 << 20)   # leave headroom on every part

    n_pad, tm, tn = _pick_tiles(n, d, feat_itemsize, budget)
    if block_q is not None:
        tm = block_q
    if block_k is not None:
        tn = block_k
    pad = n_pad - n

    # Features stay in their native dtype (bf16 feeds the MXU in a single pass);
    # the same padded array is read both as query tiles and as key tiles.
    x = jnp.pad(inputs, ((0, pad), (0, 0)))

    # Hoisted per-row inverse norms (reference epsilon: x / (||x|| + 1e-12)).
    xf = x.astype(jnp.float32)
    inv = 1.0 / (jnp.sqrt(jnp.sum(xf * xf, axis=-1)) + 1e-12)
    inv_row = inv.reshape(n_pad, 1)
    inv_col = inv.reshape(1, n_pad)

    # Labels as int32 (exact); padded rows get a sentinel matching nothing real.
    t = jnp.pad(targets.astype(jnp.int32), (0, pad), constant_values=_PAD_LABEL)
    t_row = t.reshape(n_pad, 1)
    t_col = t.reshape(1, n_pad)

    # +_BIG on padded key columns so they never win the hard-negative min.
    col_bias = jnp.where(jnp.arange(n_pad) < n, 0.0, _BIG).astype(jnp.float32)
    col_bias = col_bias.reshape(1, n_pad)

    est = _vmem_estimate(tm, tn, d, feat_itemsize)
    vmem_limit = int(min(max(est, 32 << 20), budget))

    grid = (n_pad // tm, n_pad // tn)
    per_row = pl.pallas_call(
        functools.partial(_triplet_kernel, margin=float(margin), tm=tm),
        out_shape=jax.ShapeDtypeStruct((1, n_pad), jnp.float32),
        grid=grid,
        in_specs=[
            pl.BlockSpec((tm, d), lambda i, j: (i, 0)),   # query rows (native dtype)
            pl.BlockSpec((tn, d), lambda i, j: (j, 0)),   # key rows (native dtype)
            pl.BlockSpec((tm, 1), lambda i, j: (i, 0)),   # 1 / ||q||
            pl.BlockSpec((1, tn), lambda i, j: (0, j)),   # 1 / ||k||
            pl.BlockSpec((tm, 1), lambda i, j: (i, 0)),   # query labels (int32)
            pl.BlockSpec((1, tn), lambda i, j: (0, j)),   # key labels (int32)
            pl.BlockSpec((1, tn), lambda i, j: (0, j)),   # padded-column bias
        ],
        out_specs=pl.BlockSpec((1, tm), lambda i, j: (0, i)),   # lane-dense hinge
        scratch_shapes=[pltpu.VMEM((tm, 1), jnp.float32),       # running max dist_ap^2
                        pltpu.VMEM((tm, 1), jnp.float32)],      # running min dist_an^2
        compiler_params=pltpu.CompilerParams(
            dimension_semantics=("parallel", "arbitrary"),
            vmem_limit_bytes=vmem_limit),
    )(x, x, inv_row, inv_col, t_row, t_col, col_bias)

    # MarginRankingLoss(margin)(dist_an, dist_ap, y=1): mean over the real rows.
    return jnp.sum(per_row[0, :n]) / n


def _reference(inputs, targets, margin=0.3):
    """Pure-JAX port of the PyTorch forward (for the correctness check)."""
    x = inputs.astype(jnp.float32)
    x = x / (jnp.linalg.norm(x, axis=-1, keepdims=True) + 1e-12)
    sq = jnp.sum(x * x, axis=-1, keepdims=True)
    gram = jnp.dot(x, x.T, precision=jax.lax.Precision.HIGHEST)
    dist = jnp.sqrt(jnp.maximum(sq + sq.T - 2.0 * gram, 1e-12))
    mask = targets[:, None] == targets[None, :]
    dist_ap = jnp.max(jnp.where(mask, dist, -jnp.inf), axis=1)
    dist_an = jnp.min(jnp.where(mask, jnp.inf, dist), axis=1)
    return jnp.mean(jnp.maximum(dist_ap - dist_an + margin, 0.0))


if __name__ == "__main__":
    key = jax.random.PRNGKey(0)
    k0, k1 = jax.random.split(key)

    # Small single-tile case (batch, feat_dim) as the module's forward implies.
    n, d = 8, 128
    inputs = jax.random.normal(k0, (n, d), dtype=jnp.float32)
    targets = jnp.array([0, 0, 1, 1, 2, 2, 3, 3], dtype=jnp.int32)
    loss = triplet_loss(inputs, targets, margin=0.3)
    jax.block_until_ready(loss)
    ref = _reference(inputs, targets, margin=0.3)
    # Tolerance covers MXU accumulation vs HIGHEST-precision XLA dot plus the
    # hoisted-norm / (2 - 2*cos) reformulation (expected diff ~1e-6).
    assert jnp.allclose(loss, ref, atol=1e-3, rtol=1e-3), (loss, ref)

    # Multi-tile case: 2 row tiles x 2 key tiles exercises the flash-style
    # running-accumulator path and the ("parallel", "arbitrary") 2-D grid.
    n2, d2 = 160, 128
    inputs2 = jax.random.normal(k1, (n2, d2), dtype=jnp.float32)
    targets2 = jnp.arange(n2, dtype=jnp.int32) // 4
    loss2 = triplet_loss(inputs2, targets2, margin=0.3, block_q=128, block_k=128)
    jax.block_until_ready(loss2)
    ref2 = _reference(inputs2, targets2, margin=0.3)
    assert jnp.allclose(loss2, ref2, atol=1e-3, rtol=1e-3), (loss2, ref2)

    print("KERNEL_OK")
</pallas_src>

<mosaic_0001>
module attributes {stable_mosaic.version = 11 : i64} {
  func.func @_triplet_kernel(%arg0: i32, %arg1: i32, %arg2: memref<8x128xf32, #tpu.memory_space<vmem>>, %arg3: memref<8x128xf32, #tpu.memory_space<vmem>>, %arg4: memref<8x1xf32, #tpu.memory_space<vmem>>, %arg5: memref<1x8xf32, #tpu.memory_space<vmem>>, %arg6: memref<8x1xi32, #tpu.memory_space<vmem>>, %arg7: memref<1x8xi32, #tpu.memory_space<vmem>>, %arg8: memref<1x8xf32, #tpu.memory_space<vmem>>, %arg9: memref<1x8xf32, #tpu.memory_space<vmem>>, %arg10: memref<8x1xf32, #tpu.memory_space<vmem>>, %arg11: memref<8x1xf32, #tpu.memory_space<vmem>>) attributes {dimension_semantics = [#tpu.dimension_semantics<parallel>, #tpu.dimension_semantics<arbitrary>], iteration_bounds = array<i64: 1, 1>, scalar_prefetch = 0 : i64, scratch_operands = 2 : i64, tpu.core_type = #tpu.core_type<tc>, window_params = [{transform_indices = @transform_0, window_bounds = array<i64: 8, 128>}, {transform_indices = @transform_1, window_bounds = array<i64: 8, 128>}, {transform_indices = @transform_2, window_bounds = array<i64: 8, 1>}, {transform_indices = @transform_3, window_bounds = array<i64: 1, 8>}, {transform_indices = @transform_4, window_bounds = array<i64: 8, 1>}, {transform_indices = @transform_5, window_bounds = array<i64: 1, 8>}, {transform_indices = @transform_6, window_bounds = array<i64: 1, 8>}, {transform_indices = @transform_7, window_bounds = array<i64: 1, 8>}]} {
    %c0_i32 = arith.constant 0 : i32
    %0 = arith.cmpi eq, %arg1, %c0_i32 : i32
    %1 = arith.extui %0 : i1 to i32
    %c0_i32_0 = arith.constant 0 : i32
    %2 = arith.cmpi ne, %1, %c0_i32_0 : i32
    scf.if %2 {
      %cst_30 = arith.constant -1.000000e+00 : f32
      %41 = vector.broadcast %cst_30 : f32 to vector<8x1xf32>
      %c0_31 = arith.constant 0 : index
      %c0_32 = arith.constant 0 : index
      %42 = vector.load %arg10[%c0_31, %c0_32] : memref<8x1xf32, #tpu.memory_space<vmem>>, vector<8x1xf32>
      tpu.vector_store %arg10[%c0_31, %c0_32], %41 {strides = array<i32>} : memref<8x1xf32, #tpu.memory_space<vmem>>, vector<8x1xf32>,
      %cst_33 = arith.constant 1.000000e+30 : f32
      %43 = vector.broadcast %cst_33 : f32 to vector<8x1xf32>
      %c0_34 = arith.constant 0 : index
      %c0_35 = arith.constant 0 : index
      %44 = vector.load %arg11[%c0_34, %c0_35] : memref<8x1xf32, #tpu.memory_space<vmem>>, vector<8x1xf32>
      tpu.vector_store %arg11[%c0_34, %c0_35], %43 {strides = array<i32>} : memref<8x1xf32, #tpu.memory_space<vmem>>, vector<8x1xf32>,
    } else {
    }
    %c0 = arith.constant 0 : index
    %c0_1 = arith.constant 0 : index
    %3 = vector.load %arg2[%c0, %c0_1] : memref<8x128xf32, #tpu.memory_space<vmem>>, vector<8x128xf32>
    %c0_2 = arith.constant 0 : index
    %c0_3 = arith.constant 0 : index
    %4 = vector.load %arg3[%c0_2, %c0_3] : memref<8x128xf32, #tpu.memory_space<vmem>>, vector<8x128xf32>
    %cst = arith.constant dense<0.000000e+00> : vector<8x8xf32>
    %5 = tpu.matmul %3, %4, %cst {dimension_numbers = #tpu.dot_dimension_numbers<[1], [1], [0], [0], [0, 0, 1, 0], [], []>} : vector<8x128xf32>, vector<8x128xf32>, vector<8x8xf32> -> vector<8x8xf32>
    %c0_4 = arith.constant 0 : index
    %c0_5 = arith.constant 0 : index
    %6 = vector.load %arg4[%c0_4, %c0_5] : memref<8x1xf32, #tpu.memory_space<vmem>>, vector<8x1xf32>
    %7 = vector.broadcast %6 : vector<8x1xf32> to vector<8x8xf32>
    %8 = arith.mulf %5, %7 : vector<8x8xf32>
    %c0_6 = arith.constant 0 : index
    %c0_7 = arith.constant 0 : index
    %9 = vector.load %arg5[%c0_6, %c0_7] : memref<1x8xf32, #tpu.memory_space<vmem>>, vector<1x8xf32>
    %10 = vector.broadcast %9 : vector<1x8xf32> to vector<8x8xf32>
    %11 = arith.mulf %8, %10 : vector<8x8xf32>
    %cst_8 = arith.constant 2.000000e+00 : f32
    %12 = vector.broadcast %cst_8 : f32 to vector<8x8xf32>
    %13 = arith.mulf %12, %11 : vector<8x8xf32>
    %cst_9 = arith.constant 2.000000e+00 : f32
    %14 = vector.broadcast %cst_9 : f32 to vector<8x8xf32>
    %15 = arith.subf %14, %13 : vector<8x8xf32>
    %c0_10 = arith.constant 0 : index
    %c0_11 = arith.constant 0 : index
    %16 = vector.load %arg8[%c0_10, %c0_11] : memref<1x8xf32, #tpu.memory_space<vmem>>, vector<1x8xf32>
    %17 = vector.broadcast %16 : vector<1x8xf32> to vector<8x8xf32>
    %18 = arith.addf %15, %17 : vector<8x8xf32>
    %c0_12 = arith.constant 0 : index
    %c0_13 = arith.constant 0 : index
    %19 = vector.load %arg6[%c0_12, %c0_13] : memref<8x1xi32, #tpu.memory_space<vmem>>, vector<8x1xi32>
    %c0_14 = arith.constant 0 : index
    %c0_15 = arith.constant 0 : index
    %20 = vector.load %arg7[%c0_14, %c0_15] : memref<1x8xi32, #tpu.memory_space<vmem>>, vector<1x8xi32>
    %21 = vector.broadcast %19 : vector<8x1xi32> to vector<8x8xi32>
    %22 = vector.broadcast %20 : vector<1x8xi32> to vector<8x8xi32>
    %23 = arith.cmpi eq, %21, %22 : vector<8x8xi32>
    %c0_16 = arith.constant 0 : index
    %c0_17 = arith.constant 0 : index
    %24 = vector.load %arg10[%c0_16, %c0_17] : memref<8x1xf32, #tpu.memory_space<vmem>>, vector<8x1xf32>
    %cst_18 = arith.constant -1.000000e+00 : f32
    %25 = vector.broadcast %cst_18 : f32 to vector<8x8xf32>
    %26 = arith.select %23, %18, %25 : vector<8x8xi1>, vector<8x8xf32>
    %cst_19 = arith.constant dense<0xFF800000> : vector<8xf32>
    %27 = vector.multi_reduction <maximumf>, %26, %cst_19 [1] : vector<8x8xf32> to vector<8xf32>
    %28 = vector.shape_cast %27 : vector<8xf32> to vector<8x1xf32>
    %29 = arith.maximumf %24, %28 : vector<8x1xf32>
    %c0_20 = arith.constant 0 : index
    %c0_21 = arith.constant 0 : index
    %30 = vector.load %arg10[%c0_20, %c0_21] : memref<8x1xf32, #tpu.memory_space<vmem>>, vector<8x1xf32>
    tpu.vector_store %arg10[%c0_20, %c0_21], %29 {strides = array<i32>} : memref<8x1xf32, #tpu.memory_space<vmem>>, vector<8x1xf32>,
    %c0_22 = arith.constant 0 : index
    %c0_23 = arith.constant 0 : index
    %31 = vector.load %arg11[%c0_22, %c0_23] : memref<8x1xf32, #tpu.memory_space<vmem>>, vector<8x1xf32>
    %cst_24 = arith.constant 1.000000e+30 : f32
    %32 = vector.broadcast %cst_24 : f32 to vector<8x8xf32>
    %33 = arith.select %23, %32, %18 : vector<8x8xi1>, vector<8x8xf32>
    %cst_25 = arith.constant dense<0x7F800000> : vector<8xf32>
    %34 = vector.multi_reduction <minimumf>, %33, %cst_25 [1] : vector<8x8xf32> to vector<8xf32>
    %35 = vector.shape_cast %34 : vector<8xf32> to vector<8x1xf32>
    %36 = arith.minimumf %31, %35 : vector<8x1xf32>
    %c0_26 = arith.constant 0 : index
    %c0_27 = arith.constant 0 : index
    %37 = vector.load %arg11[%c0_26, %c0_27] : memref<8x1xf32, #tpu.memory_space<vmem>>, vector<8x1xf32>
    tpu.vector_store %arg11[%c0_26, %c0_27], %36 {strides = array<i32>} : memref<8x1xf32, #tpu.memory_space<vmem>>, vector<8x1xf32>,
    %c0_i32_28 = arith.constant 0 : i32
    %38 = arith.cmpi eq, %arg1, %c0_i32_28 : i32
    %39 = arith.extui %38 : i1 to i32
    %c0_i32_29 = arith.constant 0 : i32
    %40 = arith.cmpi ne, %39, %c0_i32_29 : i32
    scf.if %40 {
      %c0_30 = arith.constant 0 : index
      %c0_31 = arith.constant 0 : index
      %41 = vector.load %arg10[%c0_30, %c0_31] : memref<8x1xf32, #tpu.memory_space<vmem>>, vector<8x1xf32>
      %cst_32 = arith.constant 9.99999996E-13 : f32
      %42 = vector.broadcast %cst_32 : f32 to vector<8x1xf32>
      %43 = arith.maximumf %41, %42 : vector<8x1xf32>
      %44 = math.sqrt %43 : vector<8x1xf32>
      %c0_33 = arith.constant 0 : index
      %c0_34 = arith.constant 0 : index
      %45 = vector.load %arg11[%c0_33, %c0_34] : memref<8x1xf32, #tpu.memory_space<vmem>>, vector<8x1xf32>
      %cst_35 = arith.constant 9.99999996E-13 : f32
      %46 = vector.broadcast %cst_35 : f32 to vector<8x1xf32>
      %47 = arith.maximumf %45, %46 : vector<8x1xf32>
      %48 = math.sqrt %47 : vector<8x1xf32>
      %49 = arith.subf %44, %48 : vector<8x1xf32>
      %cst_36 = arith.constant 3.000000e-01 : f32
      %50 = vector.broadcast %cst_36 : f32 to vector<8x1xf32>
      %51 = arith.addf %49, %50 : vector<8x1xf32>
      %cst_37 = arith.constant 0.000000e+00 : f32
      %52 = vector.broadcast %cst_37 : f32 to vector<8x1xf32>
      %53 = arith.maximumf %51, %52 : vector<8x1xf32>
      %54 = tpu.iota {dimensions = array<i32: 0>} : vector<8x8xi32>
      %55 = tpu.iota {dimensions = array<i32: 1>} : vector<8x8xi32>
      %56 = arith.cmpi eq, %54, %55 : vector<8x8xi32>
      %57 = vector.shape_cast %53 : vector<8x1xf32> to vector<8x1xf32>
      %58 = vector.broadcast %57 : vector<8x1xf32> to vector<8x8xf32>
      %cst_38 = arith.constant 0.000000e+00 : f32
      %59 = vector.broadcast %cst_38 : f32 to vector<8x8xf32>
      %60 = arith.select %56, %58, %59 : vector<8x8xi1>, vector<8x8xf32>
      %cst_39 = arith.constant dense<0.000000e+00> : vector<8xf32>
      %61 = vector.multi_reduction <add>, %60, %cst_39 [0] : vector<8x8xf32> to vector<8xf32>
      %62 = vector.shape_cast %61 : vector<8xf32> to vector<1x8xf32>
      %c0_40 = arith.constant 0 : index
      %c0_41 = arith.constant 0 : index
      %63 = vector.load %arg9[%c0_40, %c0_41] : memref<1x8xf32, #tpu.memory_space<vmem>>, vector<1x8xf32>
      tpu.vector_store %arg9[%c0_40, %c0_41], %62 {strides = array<i32>} : memref<1x8xf32, #tpu.memory_space<vmem>>, vector<1x8xf32>,
    } else {
    }
    return
  }
  func.func @transform_0(%arg0: i32, %arg1: i32) -> (i32, i32) {
    %c0_i32 = arith.constant 0 : i32
    %c0_i32_0 = arith.constant 0 : i32
    return %arg0, %c0_i32 : i32, i32
  }
  func.func @transform_1(%arg0: i32, %arg1: i32) -> (i32, i32) {
    %c0_i32 = arith.constant 0 : i32
    %c0_i32_0 = arith.constant 0 : i32
    return %arg1, %c0_i32 : i32, i32
  }
  func.func @transform_2(%arg0: i32, %arg1: i32) -> (i32, i32) {
    %c0_i32 = arith.constant 0 : i32
    %c0_i32_0 = arith.constant 0 : i32
    return %arg0, %c0_i32 : i32, i32
  }
  func.func @transform_3(%arg0: i32, %arg1: i32) -> (i32, i32) {
    %c0_i32 = arith.constant 0 : i32
    %c0_i32_0 = arith.constant 0 : i32
    return %c0_i32, %arg1 : i32, i32
  }
  func.func @transform_4(%arg0: i32, %arg1: i32) -> (i32, i32) {
    %c0_i32 = arith.constant 0 : i32
    %c0_i32_0 = arith.constant 0 : i32
    return %arg0, %c0_i32 : i32, i32
  }
  func.func @transform_5(%arg0: i32, %arg1: i32) -> (i32, i32) {
    %c0_i32 = arith.constant 0 : i32
    %c0_i32_0 = arith.constant 0 : i32
    return %c0_i32, %arg1 : i32, i32
  }
  func.func @transform_6(%arg0: i32, %arg1: i32) -> (i32, i32) {
    %c0_i32 = arith.constant 0 : i32
    %c0_i32_0 = arith.constant 0 : i32
    return %c0_i32, %arg1 : i32, i32
  }
  func.func @transform_7(%arg0: i32, %arg1: i32) -> (i32, i32) {
    %c0_i32 = arith.constant 0 : i32
    %c0_i32_0 = arith.constant 0 : i32
    return %c0_i32, %arg0 : i32, i32
  }
}

</mosaic_0001>

<bundles_post_ra>
// kernel: tpu_custom_call.1
= control target key start
LH: loop header
LB: loop body
LE: loop exit
PB: predicated region body
PF: predicated region fallthrough
CT: control target
= control target key end

     0   :  { %v258_v2 = vmov 0.0   ;;  %vm259_vm0 = vmmov 0   ;;  %s331_s0 = inlined_call_operand.vmem [shape: f32[8,128], index: 0, kind: input, shape index: {}]   ;;  %s332_s1 = inlined_call_operand.vmem [shape: f32[8,128], index: 1, kind: input, shape index: {}]   ;;  %s333_s2 = inlined_call_operand.vmem [shape: f32[8,1], index: 2, kind: input, shape index: {}]   ;;  %s334_s3 = inlined_call_operand.vmem [shape: f32[1,8], index: 3, kind: input, shape index: {}]   ;;  %s335_s4 = inlined_call_operand.vmem [shape: s32[8,1], index: 4, kind: input, shape index: {}]   ;;  %s336_s5 = inlined_call_operand.vmem [shape: s32[1,8], index: 5, kind: input, shape index: {}]   ;;  %s337_s6 = inlined_call_operand.vmem [shape: f32[1,8], index: 6, kind: input, shape index: {}]   ;;  %s338_s7 = inlined_call_operand.hbm [shape: f32[1,8], index: 7, kind: output, shape index: {}]  }
   0x1   :  { %v35_v0 = vld [vmem:[%s332_s1] sm:$0xff]  ;;  %220 = vmatprep.subr.mxu0 %v258_v2  ;;  %222 = vmatprep.mubr.msk.f32.mxu0 %vm259_vm0, %v258_v2 }
   0x2   :  { %v106_v1 = vld [vmem:[%s333_s2] sm:$0xff] }
   0x3   :  { %12 = vsyncpa [#allocation5], 0  ;;  %221 = vmatpush3.xpose.msra.mxu0 %v35_v0  ;;  %v34_v3 = vld [vmem:[%s331_s0] sm:$0xff]  ;;  %v260_v4 = vmov 0   ;;  %vm143_vm1 = vcmask 64512   ;;  %vm31_vm3 = vcmask 7168   ;;  %v181_v47 = vlaneseq }
   0x4   :  { %231 = vset.pattern.permute.xlu0 %v260_v4  ;;  %v131_v5 = vld [vmem:[%s335_s4] sm:$0xff]  ;;  %v261_v21 = vmov -1.0   ;;  %v262_v23 = vmov 1e+30   ;;  %vm199_vm9 = vcmask 57344  }
   0x5   :  { %109 = vperm.xlu0 %231, %v106_v1   ;;  %v215_v8 = vld [vmem:[%s334_s3] ss:$0 sm:$0xff]  ;;  %32 = vst.msk [vmem:[#allocation2] sm:$0xff] %vm31_vm3, %v261_v21  ;;  %33 = vst.msk [vmem:[#allocation3] sm:$0xff] %vm31_vm3, %v262_v23  ;;  %v182_v48 = vshrl.u32 %v181_v47, 7  ;;  %v184_v49 = vand.u32 127, %v181_v47 }
   0x6   :  { %223 = vmatmul.mubr.f32.vlgmr.msra.gmra.mxu0 %v34_v3  ;;  %v216_v13 = vld [vmem:[%s337_s6] ss:$0 sm:$0xff]  ;;  %s263_s3 = smov [#allocation4]  }
   0x7   :  { %v217_v14 = vld [vmem:[%s336_s5] ss:$0 sm:$0xff]  ;;  %vm185_vm8 = vcmp.eq.s32.totalorder %v182_v48, %v184_v49  ;;  %s207_s4 = sshll.u32 %s263_s3, 4  ;;  %s208_s4 = int_to_ptr.vmem [resolvable:$true] %s207_s4 }
   0x8   :  { %s236_s5 = scalar_lea.vmem %s208_s4, 16  ;;  %s240_s6 = scalar_lea.vmem %s208_s4, 32 }
   0x9   :  { %134 = vperm.xlu0 %231, %v131_v5   ;;  %p237_p0 = scmp.ne.s32.totalorder %s208_s4, %s236_s5  ;;  %p241_p1 = scmp.lt.s32.totalorder %s208_s4, %s208_s4 }
   0xa   :  { %p242_p2 = scmp.lt.s32.totalorder %s240_s6, %s236_s5 }
   0xc   :  { %v141_v24 = vld [vmem:[#allocation2] sm:$0xff]  ;;  %v150_v27 = vld [vmem:[#allocation3] sm:$0xff]  ;;  %p243_p3 = por %p242_p2, %p241_p1 }
   0xe   :  { %p244_p4 = pnand %p243_p3, %p237_p0 }
  0x80   :  { %v110_v6 = vpop.permute.xlu0 %109 }
  0x84   :  { %v135_v15 = vpop.permute.xlu0 %134 }
  0x85   :  { %vm140_vm2 = vcmp.eq.s32.totalorder %v135_v15, %v217_v14 }
  0xc6   :  { %v102_v7 = vpop.f32.mrf.mxu0 }
  0xc7   :  { %v112_v9 = vmul.f32 %v110_v6, %v102_v7 }
  0xc8   :  { %v224_v10 = vpop.f32.mrf.mxu0 }
  0xc9   :  { %v120_v11 = vmul.f32 %v215_v8, %v112_v9 }
  0xcb   :  { %v121_v12 = vmul.f32 2.0, %v120_v11 }
  0xcd   :  { %v122_v16 = vsub.f32 2.0, %v121_v12 }
  0xcf   :  { %v130_v17 = vadd.f32 %v216_v13, %v122_v16 }
  0xd1   :  { %v142_v18 = vsel %vm140_vm2, %v130_v17, -1.0  ;;  %v151_v20 = vsel %vm140_vm2, 1e+30, %v130_v17 }
  0xd2   :  { %v144_v19 = vsel %vm143_vm1, %v142_v18, -inf  ;;  %v152_v22 = vsel %vm143_vm1, %v151_v20, inf }
  0xd3   :  { %145 = vmax.xlane.f32.xlu1 %v144_v19 }
  0xd7   :  { %153 = vmin.xlane.f32.xlu1 %v152_v22 }
 0x15c   :  { %v146_v25 = vpop.xlane.xlu1 %145 }
 0x15d   :  { %v147_v26 = vmax.f32 %v141_v24, %v146_v25 }
 0x15f   :  { %149 = vst.msk [vmem:[#allocation2] sm:$0xff] %vm31_vm3, %v147_v26 }
 0x160   :  { %v154_v28 = vpop.xlane.xlu1 %153 }
 0x161   :  { %v155_v29 = vmin.f32 %v150_v27, %v154_v28 }
 0x163   :  { %156 = vst.msk [vmem:[#allocation3] sm:$0xff] %vm31_vm3, %v155_v29 }
 0x166   :  { %v160_v30 = vld [vmem:[#allocation2] sm:$0xff] }
 0x167   :  { %v161_v31 = vmax.f32 %v160_v30, 1e-12 }
 0x169   :  { %232 = vrsqrt.f32 %v161_v31  ;;  %vm164_vm4 = vcmp.eq.f32.partialorder %v161_v31, inf  ;;  %v167_v39 = vand.u32 2147483648, %v161_v31  ;;  %vm166_vm6 = vcmp.eq.f32.partialorder %v161_v31, 0.0 }
 0x16a   :  { %v169_v32 = vld [vmem:[#allocation3] sm:$0xff] }
 0x16b   :  { %v170_v33 = vmax.f32 %v169_v32, 1e-12 }
 0x16d   :  { %234 = vrsqrt.f32 %v170_v33  ;;  %vm173_vm5 = vcmp.eq.f32.partialorder %v170_v33, inf  ;;  %v176_v40 = vand.u32 2147483648, %v170_v33  ;;  %vm175_vm7 = vcmp.eq.f32.partialorder %v170_v33, 0.0 }
 0x176   :  { %v233_v34 = vpop.eup %232 }
 0x177   :  { %v163_v35 = vmul.f32 %v233_v34, %v161_v31 }
 0x179   :  { %v165_v37 = vsel %vm164_vm4, %v161_v31, %v163_v35 }
 0x17a   :  { %v235_v36 = vpop.eup %234  ;;  %v168_v42 = vsel %vm166_vm6, %v167_v39, %v165_v37 }
 0x17b   :  { %v172_v38 = vmul.f32 %v235_v36, %v170_v33 }
 0x17d   :  { %v174_v41 = vsel %vm173_vm5, %v170_v33, %v172_v38 }
 0x17e   :  { %v177_v43 = vsel %vm175_vm7, %v176_v40, %v174_v41 }
 0x17f   :  { %v178_v44 = vsub.f32 %v168_v42, %v177_v43 }
 0x181   :  { %v179_v45 = vadd.f32 0.3, %v178_v44 }
 0x183   :  { %v180_v46 = vmax.f32 %v179_v45, 0.0 }
 0x185   :  { %188 = vperm.xlu0 %231, %v180_v46  }
 0x200   :  { %v189_v50 = vpop.permute.xlu0 %188 }
 0x201   :  { %v191_v51 = vsel %vm185_vm8, %v189_v50, 0.0 }
 0x202   :  { %v192_v52 = vsel %vm143_vm1, %v191_v51, 0.0 }
 0x203   :  { %v193_v53 = vrot.slane %v192_v52, 4 }
 0x205   :  { %v194_v54 = vadd.f32 %v193_v53, %v192_v52 }
 0x207   :  { %v195_v55 = vrot.slane %v194_v54, 2 }
 0x209   :  { %v196_v56 = vadd.f32 %v195_v55, %v194_v54 }
 0x20b   :  { %v197_v57 = vrot.slane %v196_v56, 1 }
 0x20d   :  { %v198_v58 = vadd.f32 %v197_v57, %v196_v56 }
 0x20f   :  { %200 = vst.msk [vmem:[#allocation4] sm:$0x1] %vm199_vm9, %v198_v58 }
 0x210   :  { %247 = shalt.err (!%p244_p4)
}
 0x211   :  { %210 = dma.vmem_to_hbm [thread:$0]  %s208_s4, 16, %s338_s7, [#allocation5]  }
 0x212   :  { %256 = dma.done.wait [#allocation5], 16  }
 0x213   :  { %257 = vsyncadd [#allocation5], 4294967280 }
 0x214   :  { %214 = vsyncpa [#allocation5], 1 }

</bundles_post_ra>
